<compile_context>
chip_gen: v7x
topology: tpu7x:2x2x1
jax: 0.10.0
libtpu: 0.0.40
codegen_flags: <defaults>
</compile_context>

<pallas_src>
import functools

import jax
import jax.numpy as jnp
from jax import lax
from jax.experimental import pallas as pl
from jax.experimental.pallas import tpu as pltpu

BN_EPS = 1e-5


def _round_up(x, m):
    return ((x + m - 1) // m) * m


# ---------------------------------------------------------------------------
# Pass 1: tiled matmul + per-tile partial BN statistics
# ---------------------------------------------------------------------------
def _matmul_stats_kernel(p_ref, w_ref, y_ref, stats_ref):
    # p_ref    : (TILE_M, C_in*K)   im2col patch tile
    # w_ref    : (C_in*K, C_pad)    flattened conv weight (resident across grid)
    # y_ref    : (TILE_M, C_pad)    raw conv output tile
    # stats_ref: (8, C_pad)         row 0 = per-channel sum, row 1 = sum of squares
    y = jnp.dot(p_ref[...], w_ref[...], preferred_element_type=jnp.float32)
    y_ref[...] = y

    s = jnp.sum(y, axis=0, keepdims=True)          # (1, C_pad)
    sq = jnp.sum(y * y, axis=0, keepdims=True)     # (1, C_pad)

    # Pack (sum, sumsq) into one lane-dense (8, C_pad) tile with a single store.
    row = lax.broadcasted_iota(jnp.int32, stats_ref.shape, 0)
    stats = jnp.where(row == 0, jnp.broadcast_to(s, stats_ref.shape),
                      jnp.where(row == 1, jnp.broadcast_to(sq, stats_ref.shape), 0.0))
    stats_ref[...] = stats


# ---------------------------------------------------------------------------
# Pass 2: tiled normalize + affine + ReLU
# ---------------------------------------------------------------------------
def _bn_relu_kernel(y_ref, scale_ref, shift_ref, out_ref):
    # y_ref: (TILE_M, C_pad); scale/shift: (1, C_pad) resident across the grid
    out_ref[...] = jnp.maximum(
        y_ref[...] * scale_ref[...] + shift_ref[...], 0.0
    ).astype(out_ref.dtype)


# ---------------------------------------------------------------------------
# Wrapper
# ---------------------------------------------------------------------------
@functools.partial(jax.jit, static_argnames=("stride", "pad", "dilation", "tile_m"))
def conv_bn_relu_1d(x, weight, gamma, beta, *, stride=1, pad=1, dilation=1,
                    tile_m=512):
    """x: (N, C_in, L) f32; weight: (C_out, C_in, K); gamma/beta: (C_out,)."""
    N, C_in, L = x.shape
    C_out, _, K = weight.shape
    L_out = (L + 2 * pad - dilation * (K - 1) - 1) // stride + 1
    M = N * L_out
    CK = C_in * K

    # ---- glue: padding + im2col (data rearrangement only, done once by XLA) --
    x_pad = jnp.pad(x.astype(jnp.float32), ((0, 0), (0, 0), (pad, pad)))
    cols = [
        x_pad[:, :, k * dilation: k * dilation + stride * (L_out - 1) + 1: stride]
        for k in range(K)
    ]                                                       # K x (N, C_in, L_out)
    patches = jnp.stack(cols, axis=2)                       # (N, C_in, K, L_out)
    patches = patches.transpose(0, 3, 1, 2).reshape(M, CK)  # (M, C_in*K)

    # ---- tiling / padding for lane-dense blocks ------------------------------
    C_pad = _round_up(C_out, 128)            # lane-dense output channels
    tile_m = min(tile_m, _round_up(M, 8))    # rows per grid step (8-aligned)
    M_pad = _round_up(M, tile_m)
    num_tiles = M_pad // tile_m

    patches = jnp.pad(patches, ((0, M_pad - M), (0, 0)))    # zero rows: no effect on stats
    w_flat = weight.reshape(C_out, CK).T.astype(jnp.float32)
    w_flat = jnp.pad(w_flat, ((0, 0), (0, C_pad - C_out)))  # zero cols -> y==0 there

    # ---- pass 1: matmul + per-tile partial sums ------------------------------
    y, stats = pl.pallas_call(
        _matmul_stats_kernel,
        out_shape=(
            jax.ShapeDtypeStruct((M_pad, C_pad), jnp.float32),
            jax.ShapeDtypeStruct((num_tiles * 8, C_pad), jnp.float32),
        ),
        grid_spec=pltpu.PrefetchScalarGridSpec(
            num_scalar_prefetch=0,
            grid=(num_tiles,),
            in_specs=[
                pl.BlockSpec((tile_m, CK), lambda i: (i, 0)),
                pl.BlockSpec((CK, C_pad), lambda i: (0, 0)),   # weight stays resident
            ],
            out_specs=(
                pl.BlockSpec((tile_m, C_pad), lambda i: (i, 0)),
                pl.BlockSpec((8, C_pad), lambda i: (i, 0)),
            ),
        ),
        compiler_params=pltpu.CompilerParams(
            dimension_semantics=("parallel",),                 # megacore-shardable
        ),
        cost_estimate=pl.CostEstimate(
            flops=2 * M_pad * CK * C_pad + 3 * M_pad * C_pad,
            transcendentals=0,
            bytes_accessed=4 * (M_pad * CK + CK * C_pad + M_pad * C_pad
                                + num_tiles * 8 * C_pad),
        ),
    )(patches, w_flat)

    # ---- tiny per-channel finalize on the host side --------------------------
    stats = stats.reshape(num_tiles, 8, C_pad)
    col_sum = jnp.sum(stats[:, 0, :], axis=0)        # (C_pad,)
    col_sumsq = jnp.sum(stats[:, 1, :], axis=0)      # (C_pad,)
    inv_n = jnp.float32(1.0 / M)                     # true n = N*L_out (pad rows are zero)
    mean = col_sum * inv_n
    var = jnp.maximum(col_sumsq * inv_n - mean * mean, 0.0)   # biased batch variance

    gamma_p = jnp.pad(gamma.astype(jnp.float32), (0, C_pad - C_out))
    beta_p = jnp.pad(beta.astype(jnp.float32), (0, C_pad - C_out))
    scale = (gamma_p * lax.rsqrt(var + BN_EPS)).reshape(1, C_pad)
    shift = (beta_p - mean * scale[0]).reshape(1, C_pad)

    # ---- pass 2: normalize + affine + ReLU ------------------------------------
    out_flat = pl.pallas_call(
        _bn_relu_kernel,
        out_shape=jax.ShapeDtypeStruct((M_pad, C_pad), jnp.float32),
        grid_spec=pltpu.PrefetchScalarGridSpec(
            num_scalar_prefetch=0,
            grid=(num_tiles,),
            in_specs=[
                pl.BlockSpec((tile_m, C_pad), lambda i: (i, 0)),
                pl.BlockSpec((1, C_pad), lambda i: (0, 0)),
                pl.BlockSpec((1, C_pad), lambda i: (0, 0)),
            ],
            out_specs=pl.BlockSpec((tile_m, C_pad), lambda i: (i, 0)),
        ),
        compiler_params=pltpu.CompilerParams(
            dimension_semantics=("parallel",),
        ),
    )(y, scale, shift)

    # back to PyTorch NCL layout (outside the hot path)
    out = out_flat[:M, :C_out].reshape(N, L_out, C_out).transpose(0, 2, 1)
    return out


# ---------------------------------------------------------------------------
# Pure-JAX reference and init
# ---------------------------------------------------------------------------
def _reference(x, weight, gamma, beta, *, stride=1, pad=1, dilation=1):
    y = lax.conv_general_dilated(
        x, weight,
        window_strides=(stride,),
        padding=[(pad, pad)],
        rhs_dilation=(dilation,),
        dimension_numbers=("NCH", "OIH", "NCH"),
    )
    mean = jnp.mean(y, axis=(0, 2), keepdims=True)
    var = jnp.mean((y - mean) ** 2, axis=(0, 2), keepdims=True)
    y_hat = (y - mean) * lax.rsqrt(var + BN_EPS)
    out = y_hat * gamma.reshape(1, -1, 1) + beta.reshape(1, -1, 1)
    return jnp.maximum(out, 0.0)


def _init_params(key, in_channels, out_channels, kernel_size):
    # Orthogonal-style init of the flattened conv weight (matches
    # torch.nn.init.orthogonal in spirit); BN default init weight=1, bias=0.
    a = jax.random.normal(key, (in_channels * kernel_size, out_channels), jnp.float32)
    q, _ = jnp.linalg.qr(a)
    weight = q.T.reshape(out_channels, in_channels, kernel_size)
    gamma = jnp.ones((out_channels,), jnp.float32)
    beta = jnp.zeros((out_channels,), jnp.float32)
    return weight, gamma, beta


if __name__ == "__main__":
    key = jax.random.PRNGKey(0)

    # Small case (single row tile).
    k_x, k_w, k_x2, k_w2 = jax.random.split(key, 4)
    N, C_in, C_out, L, K = 2, 4, 8, 16, 3
    x = jax.random.normal(k_x, (N, C_in, L), jnp.float32)
    weight, gamma, beta = _init_params(k_w, C_in, C_out, K)

    out = conv_bn_relu_1d(x, weight, gamma, beta, stride=1, pad=1, dilation=1)
    out = jax.block_until_ready(out)
    ref = _reference(x, weight, gamma, beta, stride=1, pad=1, dilation=1)
    assert out.shape == (N, C_out, L), out.shape
    assert jnp.allclose(out, ref, atol=1e-4, rtol=1e-4), float(jnp.max(jnp.abs(out - ref)))

    # Multi-tile case (exercises cross-tile streamed BN statistics + row padding).
    N2, C_in2, C_out2, L2 = 4, 8, 16, 300   # M = 1200 -> 3 row tiles of 512 (padded)
    x2 = jax.random.normal(k_x2, (N2, C_in2, L2), jnp.float32)
    weight2, gamma2, beta2 = _init_params(k_w2, C_in2, C_out2, K)

    out2 = conv_bn_relu_1d(x2, weight2, gamma2, beta2, stride=1, pad=1, dilation=1)
    out2 = jax.block_until_ready(out2)
    ref2 = _reference(x2, weight2, gamma2, beta2, stride=1, pad=1, dilation=1)
    assert out2.shape == (N2, C_out2, L2), out2.shape
    assert jnp.allclose(out2, ref2, atol=1e-4, rtol=1e-4), float(jnp.max(jnp.abs(out2 - ref2)))

    print("KERNEL_OK")
</pallas_src>

<mosaic_0001>
module attributes {stable_mosaic.version = 11 : i64} {
  func.func @_matmul_stats_kernel(%arg0: i32, %arg1: memref<32x12xf32, #tpu.memory_space<vmem>>, %arg2: memref<12x128xf32, #tpu.memory_space<vmem>>, %arg3: memref<32x128xf32, #tpu.memory_space<vmem>>, %arg4: memref<8x128xf32, #tpu.memory_space<vmem>>) attributes {dimension_semantics = [#tpu.dimension_semantics<parallel>], iteration_bounds = array<i64: 1>, scalar_prefetch = 0 : i64, scratch_operands = 0 : i64, tpu.core_type = #tpu.core_type<tc>, window_params = [{transform_indices = @transform_0, window_bounds = array<i64: 32, 12>}, {pipeline_mode = #tpu.pipeline_mode<synchronous>, transform_indices = @transform_1, window_bounds = array<i64: 12, 128>}, {transform_indices = @transform_2, window_bounds = array<i64: 32, 128>}, {transform_indices = @transform_3, window_bounds = array<i64: 8, 128>}]} {
    %c0 = arith.constant 0 : index
    %c0_0 = arith.constant 0 : index
    %0 = vector.load %arg1[%c0, %c0_0] : memref<32x12xf32, #tpu.memory_space<vmem>>, vector<32x12xf32>
    %c0_1 = arith.constant 0 : index
    %c0_2 = arith.constant 0 : index
    %1 = vector.load %arg2[%c0_1, %c0_2] : memref<12x128xf32, #tpu.memory_space<vmem>>, vector<12x128xf32>
    %cst = arith.constant dense<0.000000e+00> : vector<32x128xf32>
    %2 = tpu.matmul %0, %1, %cst {dimension_numbers = #tpu.dot_dimension_numbers<[1], [0], [0], [1], [0, 0, 1, 1], [], []>} : vector<32x12xf32>, vector<12x128xf32>, vector<32x128xf32> -> vector<32x128xf32>
    %c0_3 = arith.constant 0 : index
    %c0_4 = arith.constant 0 : index
    %3 = vector.load %arg3[%c0_3, %c0_4] : memref<32x128xf32, #tpu.memory_space<vmem>>, vector<32x128xf32>
    tpu.vector_store %arg3[%c0_3, %c0_4], %2 {strides = array<i32>} : memref<32x128xf32, #tpu.memory_space<vmem>>, vector<32x128xf32>,
    %cst_5 = arith.constant dense<0.000000e+00> : vector<128xf32>
    %4 = vector.multi_reduction <add>, %2, %cst_5 [0] : vector<32x128xf32> to vector<128xf32>
    %5 = vector.shape_cast %4 : vector<128xf32> to vector<1x128xf32>
    %6 = arith.mulf %2, %2 : vector<32x128xf32>
    %cst_6 = arith.constant dense<0.000000e+00> : vector<128xf32>
    %7 = vector.multi_reduction <add>, %6, %cst_6 [0] : vector<32x128xf32> to vector<128xf32>
    %8 = vector.shape_cast %7 : vector<128xf32> to vector<1x128xf32>
    %9 = tpu.iota {dimensions = array<i32: 0>} : vector<8x128xi32>
    %c0_i32 = arith.constant 0 : i32
    %10 = vector.broadcast %c0_i32 : i32 to vector<8x128xi32>
    %11 = arith.cmpi eq, %9, %10 : vector<8x128xi32>
    %12 = vector.shape_cast %5 : vector<1x128xf32> to vector<1x128xf32>
    %13 = vector.broadcast %12 : vector<1x128xf32> to vector<8x128xf32>
    %c1_i32 = arith.constant 1 : i32
    %14 = vector.broadcast %c1_i32 : i32 to vector<8x128xi32>
    %15 = arith.cmpi eq, %9, %14 : vector<8x128xi32>
    %16 = vector.shape_cast %8 : vector<1x128xf32> to vector<1x128xf32>
    %17 = vector.broadcast %16 : vector<1x128xf32> to vector<8x128xf32>
    %cst_7 = arith.constant 0.000000e+00 : f32
    %18 = vector.broadcast %cst_7 : f32 to vector<8x128xf32>
    %19 = arith.select %15, %17, %18 : vector<8x128xi1>, vector<8x128xf32>
    %20 = arith.select %11, %13, %19 : vector<8x128xi1>, vector<8x128xf32>
    %c0_8 = arith.constant 0 : index
    %c0_9 = arith.constant 0 : index
    %21 = vector.load %arg4[%c0_8, %c0_9] : memref<8x128xf32, #tpu.memory_space<vmem>>, vector<8x128xf32>
    tpu.vector_store %arg4[%c0_8, %c0_9], %20 {strides = array<i32>} : memref<8x128xf32, #tpu.memory_space<vmem>>, vector<8x128xf32>,
    return
  }
  func.func @transform_0(%arg0: i32) -> (i32, i32) {
    %c0_i32 = arith.constant 0 : i32
    %c0_i32_0 = arith.constant 0 : i32
    return %arg0, %c0_i32 : i32, i32
  }
  func.func @transform_1(%arg0: i32) -> (i32, i32) {
    %c0_i32 = arith.constant 0 : i32
    %c0_i32_0 = arith.constant 0 : i32
    %c0_i32_1 = arith.constant 0 : i32
    return %c0_i32, %c0_i32_0 : i32, i32
  }
  func.func @transform_2(%arg0: i32) -> (i32, i32) {
    %c0_i32 = arith.constant 0 : i32
    %c0_i32_0 = arith.constant 0 : i32
    return %arg0, %c0_i32 : i32, i32
  }
  func.func @transform_3(%arg0: i32) -> (i32, i32) {
    %c0_i32 = arith.constant 0 : i32
    %c0_i32_0 = arith.constant 0 : i32
    return %arg0, %c0_i32 : i32, i32
  }
}

module attributes {stable_mosaic.version = 11 : i64} {
  func.func @_bn_relu_kernel(%arg0: i32, %arg1: memref<32x128xf32, #tpu.memory_space<vmem>>, %arg2: memref<1x128xf32, #tpu.memory_space<vmem>>, %arg3: memref<1x128xf32, #tpu.memory_space<vmem>>, %arg4: memref<32x128xf32, #tpu.memory_space<vmem>>) attributes {dimension_semantics = [#tpu.dimension_semantics<parallel>], iteration_bounds = array<i64: 1>, scalar_prefetch = 0 : i64, scratch_operands = 0 : i64, tpu.core_type = #tpu.core_type<tc>, window_params = [{transform_indices = @transform_0, window_bounds = array<i64: 32, 128>}, {pipeline_mode = #tpu.pipeline_mode<synchronous>, transform_indices = @transform_1, window_bounds = array<i64: 1, 128>}, {pipeline_mode = #tpu.pipeline_mode<synchronous>, transform_indices = @transform_2, window_bounds = array<i64: 1, 128>}, {transform_indices = @transform_3, window_bounds = array<i64: 32, 128>}]} {
    %c0 = arith.constant 0 : index
    %c0_0 = arith.constant 0 : index
    %0 = vector.load %arg1[%c0, %c0_0] : memref<32x128xf32, #tpu.memory_space<vmem>>, vector<32x128xf32>
    %c0_1 = arith.constant 0 : index
    %c0_2 = arith.constant 0 : index
    %1 = vector.load %arg2[%c0_1, %c0_2] : memref<1x128xf32, #tpu.memory_space<vmem>>, vector<1x128xf32>
    %2 = vector.broadcast %1 : vector<1x128xf32> to vector<32x128xf32>
    %3 = arith.mulf %0, %2 : vector<32x128xf32>
    %c0_3 = arith.constant 0 : index
    %c0_4 = arith.constant 0 : index
    %4 = vector.load %arg3[%c0_3, %c0_4] : memref<1x128xf32, #tpu.memory_space<vmem>>, vector<1x128xf32>
    %5 = vector.broadcast %4 : vector<1x128xf32> to vector<32x128xf32>
    %6 = arith.addf %3, %5 : vector<32x128xf32>
    %cst = arith.constant 0.000000e+00 : f32
    %7 = vector.broadcast %cst : f32 to vector<32x128xf32>
    %8 = arith.maximumf %6, %7 : vector<32x128xf32>
    %c0_5 = arith.constant 0 : index
    %c0_6 = arith.constant 0 : index
    %9 = vector.load %arg4[%c0_5, %c0_6] : memref<32x128xf32, #tpu.memory_space<vmem>>, vector<32x128xf32>
    tpu.vector_store %arg4[%c0_5, %c0_6], %8 {strides = array<i32>} : memref<32x128xf32, #tpu.memory_space<vmem>>, vector<32x128xf32>,
    return
  }
  func.func @transform_0(%arg0: i32) -> (i32, i32) {
    %c0_i32 = arith.constant 0 : i32
    %c0_i32_0 = arith.constant 0 : i32
    return %arg0, %c0_i32 : i32, i32
  }
  func.func @transform_1(%arg0: i32) -> (i32, i32) {
    %c0_i32 = arith.constant 0 : i32
    %c0_i32_0 = arith.constant 0 : i32
    %c0_i32_1 = arith.constant 0 : i32
    return %c0_i32, %c0_i32_0 : i32, i32
  }
  func.func @transform_2(%arg0: i32) -> (i32, i32) {
    %c0_i32 = arith.constant 0 : i32
    %c0_i32_0 = arith.constant 0 : i32
    %c0_i32_1 = arith.constant 0 : i32
    return %c0_i32, %c0_i32_0 : i32, i32
  }
  func.func @transform_3(%arg0: i32) -> (i32, i32) {
    %c0_i32 = arith.constant 0 : i32
    %c0_i32_0 = arith.constant 0 : i32
    return %arg0, %c0_i32 : i32, i32
  }
}

</mosaic_0001>

<bundles_post_ra>
// kernel: conv_bn_relu_1d.2
= control target key start
LH: loop header
LB: loop body
LE: loop exit
PB: predicated region body
PF: predicated region fallthrough
CT: control target
= control target key end

     0   :  { %vm32_vm0 = vcmask 1043456   ;;  %vm19_vm1 = vcmask 97280   ;;  %vm192_vm2 = vmmov 1   ;;  %v147_v24 = vlaneseq  ;;  %s250_s1 = inlined_call_operand.vmem [shape: f32[12,128], index: 1, kind: input, shape index: {}]   ;;  %s251_s0 = inlined_call_operand.vmem [shape: f32[32,12], index: 0, kind: input, shape index: {}]   ;;  %s252_s2 = inlined_call_operand.vmem [shape: f32[32,128], index: 2, kind: output, shape index: {0}]   ;;  %s253_s3 = inlined_call_operand.vmem [shape: f32[8,128], index: 3, kind: output, shape index: {1}]  }
   0x1   :  { %v17_v0 = vld [vmem:[%s250_s1] sm:$0xff]  ;;  %v18_v1 = vld [vmem:[%s250_s1 + $0x8] sm:$0xf]  ;;  %vm184_vm3 = vmpackc.low %vm32_vm0, %vm192_vm2 }
   0x2   :  { %v183_v2 = vpack.c.bf16 %v18_v1, %v17_v0  ;;  %v13_v3 = vld [vmem:[%s251_s0] sm:$0xff]  ;;  %v15_v4 = vld [vmem:[%s251_s0 + $0x10] sm:$0xff]  ;;  %v14_v5 = vld [vmem:[%s251_s0 + $0x8] sm:$0xff]  ;;  %v148_v29 = vshrl.u32 %v147_v24, 7 }
   0x3   :  { %177 = vmatprep.mubr.msk.f32.mxu0 %vm19_vm1, %v13_v3  ;;  %180 = vmatprep.mubr.msk.f32.mxu1 %vm19_vm1, %v15_v4  ;;  %v16_v6 = vld [vmem:[%s251_s0 + $0x18] sm:$0xff] }
   0x4   :  { %185 = vmatprep.subr.msk.bf16.mxu0 %vm184_vm3, %v183_v2  ;;  %189 = vmatprep.subr.msk.bf16.mxu1 %vm184_vm3, %v183_v2  ;;  %vm150_vm4 = vcmp.eq.s32.totalorder %v148_v29, 1  ;;  %vm149_vm5 = vcmp.eq.s32.totalorder %v148_v29, 0 }
   0x5   :  { %188 = vmatpush3.bf16.msk.msra.mxu0 %vm184_vm3, %v183_v2  ;;  %190 = vmatpush3.bf16.msk.msra.mxu1 %vm184_vm3, %v183_v2 }
   0x8   :  { %178 = vmatmul.mubr.msk.f32.vlgmr.msra.gmra.mrb[0].mxu0 %vm19_vm1, %v14_v5  ;;  %181 = vmatmul.mubr.msk.f32.vlgmr.msra.gmra.mrb[0].mxu1 %vm19_vm1, %v16_v6 }
  0xdb   :  { %v179_v7 = vpop.f32.mrb[0].mxu0  ;;  %v182_v8 = vpop.f32.mrb[0].mxu1 }
  0xdc   :  { %122 = vst [vmem:[%s252_s2 + $0x8] sm:$0xff] %v179_v7  ;;  %v135_v9 = vmul.f32 %v179_v7, %v179_v7  ;;  %v102_v10 = vpop.f32.mrb[1].mxu0  ;;  %124 = vst [vmem:[%s252_s2 + $0x18] sm:$0xff] %v182_v8  ;;  %v112_v11 = vpop.f32.mrb[1].mxu1  ;;  %v137_v17 = vmul.f32 %v182_v8, %v182_v8 }
  0xdd   :  { %121 = vst [vmem:[%s252_s2] sm:$0xff] %v102_v10  ;;  %v125_v12 = vadd.f32 %v179_v7, %v102_v10  ;;  %v134_v13 = vmul.f32 %v102_v10, %v102_v10  ;;  %123 = vst [vmem:[%s252_s2 + $0x10] sm:$0xff] %v112_v11  ;;  %v136_v14 = vmul.f32 %v112_v11, %v112_v11 }
  0xdf   :  { %v138_v15 = vadd.f32 %v135_v9, %v134_v13  ;;  %v126_v16 = vadd.f32 %v125_v12, %v112_v11 }
  0xe1   :  { %v127_v18 = vadd.f32 %v182_v8, %v126_v16  ;;  %v139_v19 = vadd.f32 %v138_v15, %v136_v14 }
  0xe3   :  { %v128_v20 = vrot.slane %v127_v18, 4  ;;  %v140_v21 = vadd.f32 %v139_v19, %v137_v17 }
  0xe5   :  { %v129_v22 = vadd.f32 %v128_v20, %v127_v18  ;;  %v141_v23 = vrot.slane %v140_v21, 4 }
  0xe7   :  { %v130_v25 = vrot.slane %v129_v22, 2  ;;  %v142_v26 = vadd.f32 %v141_v23, %v140_v21 }
  0xe9   :  { %v131_v27 = vadd.f32 %v130_v25, %v129_v22  ;;  %v143_v28 = vrot.slane %v142_v26, 2 }
  0xeb   :  { %v144_v30 = vadd.f32 %v143_v28, %v142_v26  ;;  %v132_v31 = vrot.slane %v131_v27, 1 }
  0xed   :  { %v145_v32 = vrot.slane %v144_v30, 1  ;;  %v133_v34 = vadd.f32 %v132_v31, %v131_v27 }
  0xef   :  { %v146_v33 = vadd.f32 %v145_v32, %v144_v30 }
  0xf1   :  { %v151_v35 = vsel %vm150_vm4, %v146_v33, 0.0 }
  0xf2   :  { %v152_v36 = vsel %vm149_vm5, %v133_v34, %v151_v35 }
  0xf3   :  { %153 = vst [vmem:[%s253_s3] sm:$0xff] %v152_v36 }

// kernel: conv_bn_relu_1d.3
= control target key start
LH: loop header
LB: loop body
LE: loop exit
PB: predicated region body
PF: predicated region fallthrough
CT: control target
= control target key end

     0   :  { %s104_s0 = inlined_call_operand.vmem [shape: f32[32,128], index: 0, kind: input, shape index: {}]   ;;  %s105_s1 = inlined_call_operand.vmem [shape: f32[1,128], index: 1, kind: input, shape index: {}]   ;;  %s106_s2 = inlined_call_operand.vmem [shape: f32[1,128], index: 2, kind: input, shape index: {}]   ;;  %s107_s3 = inlined_call_operand.vmem [shape: f32[32,128], index: 3, kind: output, shape index: {}]  }
   0x1   :  { %v14_v0 = vld [vmem:[%s104_s0] sm:$0xff]  ;;  %v15_v4 = vld [vmem:[%s104_s0 + $0x8] sm:$0xff]  ;;  %v16_v5 = vld [vmem:[%s104_s0 + $0x10] sm:$0xff] }
   0x2   :  { %v52_v1 = vld [vmem:[%s105_s1] ss:$0 sm:$0xff]  ;;  %v17_v6 = vld [vmem:[%s104_s0 + $0x18] sm:$0xff] }
   0x3   :  { %v53_v2 = vld [vmem:[%s106_s2] ss:$0 sm:$0xff]  ;;  %v25_v3 = vmul.f32 %v52_v1, %v14_v0  ;;  %v26_v7 = vmul.f32 %v52_v1, %v15_v4  ;;  %v27_v8 = vmul.f32 %v52_v1, %v16_v5  ;;  %v28_v9 = vmul.f32 %v52_v1, %v17_v6 }
   0x5   :  { %v36_v10 = vadd.f32 %v53_v2, %v25_v3  ;;  %v37_v11 = vadd.f32 %v53_v2, %v26_v7  ;;  %v38_v12 = vadd.f32 %v53_v2, %v27_v8  ;;  %v39_v13 = vadd.f32 %v53_v2, %v28_v9 }
   0x7   :  { %v40_v14 = vmax.f32 %v36_v10, 0.0  ;;  %v41_v15 = vmax.f32 %v37_v11, 0.0  ;;  %v42_v16 = vmax.f32 %v38_v12, 0.0  ;;  %v43_v17 = vmax.f32 %v39_v13, 0.0 }
   0x9   :  { %44 = vst [vmem:[%s107_s3] sm:$0xff] %v40_v14  ;;  %45 = vst [vmem:[%s107_s3 + $0x8] sm:$0xff] %v41_v15 }
   0xa   :  { %46 = vst [vmem:[%s107_s3 + $0x10] sm:$0xff] %v42_v16  ;;  %47 = vst [vmem:[%s107_s3 + $0x18] sm:$0xff] %v43_v17 }

</bundles_post_ra>
